<compile_context>
chip_gen: v6e
topology: v6e:2x2x1
jax: 0.10.0
libtpu: 0.0.40
codegen_flags: <defaults>
</compile_context>

<pallas_src>
import functools

import jax
import jax.numpy as jnp
from jax.experimental import pallas as pl
from jax.experimental.pallas import tpu as pltpu

_LANE_WIDTH = 512    # lane-dense slab width (multiple of 128)
_BLOCK_ROWS = 1024   # 1024 * 512 * 4B = 2 MiB per f32 buffer; 3 bufs double-buffered
                     # = 12 MiB VMEM -> fits the 16 MiB v5e scoped default too.


def _dropout_kernel(x_ref, bits_ref, o_ref, *, threshold, scale):
    # keep iff bits >= threshold  ->  P(keep) = 1 - p  (integer compare, no
    # shift/convert/mul on the random bits).
    keep = bits_ref[...] >= jnp.uint32(threshold)
    x = x_ref[...]
    o_ref[...] = jnp.where(
        keep, x * jnp.asarray(scale, x.dtype), jnp.zeros((), x.dtype)
    ).astype(o_ref.dtype)


def _dropout_2d(x2d, bits2d, threshold, scale):
    """x2d, bits2d: (rows, width) with width a multiple of 128."""
    rows, width = x2d.shape
    # Full-extent block if the slab is small, otherwise multi-MiB blocks
    # (rows multiple of 8, width multiple of 128 -> always a legal BlockSpec).
    tm = rows if rows <= _BLOCK_ROWS else _BLOCK_ROWS
    grid = (pl.cdiv(rows, tm),)

    kernel = functools.partial(_dropout_kernel, threshold=threshold, scale=scale)
    return pl.pallas_call(
        kernel,
        out_shape=jax.ShapeDtypeStruct(x2d.shape, x2d.dtype),
        grid=grid,
        in_specs=[
            pl.BlockSpec((tm, width), lambda i: (i, 0)),
            pl.BlockSpec((tm, width), lambda i: (i, 0)),
        ],
        out_specs=pl.BlockSpec((tm, width), lambda i: (i, 0)),
        compiler_params=pltpu.CompilerParams(
            # Blocks are fully independent -> shard across both TCs on v7x;
            # measured-neutral on v5e/v6e.
            dimension_semantics=("parallel",),
        ),
    )(x2d, bits2d)


def fairseq_dropout(x, p, *, key, training=True, apply_during_inference=False):
    """JAX/Pallas equivalent of FairseqDropout.forward.

    x: any-shaped array (e.g. NCHW activations).
    """
    if not (p > 0 and (training or apply_during_inference)):
        return x  # identity path (eval mode), exactly like the PyTorch module

    p = float(p)
    scale = 1.0 / (1.0 - p)
    # Integer drop threshold on raw 32-bit randoms.
    threshold = min(int(round(p * 2.0 ** 32)), 2 ** 32 - 1)

    orig_shape = x.shape
    flat = x.reshape(-1)
    total = flat.shape[0]
    if total == 0:
        return x

    # TODO(synk): pltpu.prng_random_bits inside the kernel would halve HBM reads,
    # but it has no interpret-mode lowering, so the bits come from jax.random here.
    bits = jax.random.bits(key, (total,), jnp.uint32)

    width = _LANE_WIDTH
    rows = total // width
    aligned = rows * width

    pieces = []
    if rows > 0:
        body = _dropout_2d(
            flat[:aligned].reshape(rows, width),
            bits[:aligned].reshape(rows, width),
            threshold,
            scale,
        )
        pieces.append(body.reshape(-1))
    if total > aligned:
        # Tiny (< width elements) unaligned tail: plain jnp, no padding copy.
        tail_keep = bits[aligned:] >= jnp.uint32(threshold)
        tail = jnp.where(tail_keep, flat[aligned:] * scale, 0).astype(x.dtype)
        pieces.append(tail)

    out = pieces[0] if len(pieces) == 1 else jnp.concatenate(pieces)
    return out.reshape(orig_shape)


if __name__ == "__main__":
    root = jax.random.PRNGKey(0)
    data_key, drop_key = jax.random.split(root)

    # Small NCHW-like activation, as fairseq would feed through dropout.
    x = jax.random.normal(data_key, (2, 4, 16, 16), dtype=jnp.float32)
    p = 0.5

    # Training path: dropout applied inside the Pallas kernel.
    y_train = fairseq_dropout(x, p, key=drop_key, training=True)
    y_train = jax.block_until_ready(y_train)

    # Eval path: identity (no kernel).
    y_eval = fairseq_dropout(x, p, key=drop_key, training=False)
    y_eval = jax.block_until_ready(y_eval)

    # Sanity checks on dropout semantics.
    assert y_train.shape == x.shape and y_train.dtype == x.dtype
    mask = y_train != 0
    # Kept elements must be exactly x / (1 - p).
    assert jnp.allclose(
        jnp.where(mask, y_train, 0.0),
        jnp.where(mask, x / (1.0 - p), 0.0),
        rtol=1e-5, atol=1e-5,
    )
    # Roughly p of the elements are dropped.
    drop_frac = 1.0 - jnp.mean(mask.astype(jnp.float32))
    assert 0.3 < float(drop_frac) < 0.7
    # Eval path is the identity.
    assert jnp.array_equal(y_eval, x)

    print("KERNEL_OK")
</pallas_src>

<mosaic_0001>
module attributes {stable_mosaic.version = 11 : i64} {
  func.func @_dropout_kernel(%arg0: i32, %arg1: memref<4x512xf32, #tpu.memory_space<vmem>>, %arg2: memref<4x512xi32, #tpu.memory_space<vmem>>, %arg3: memref<4x512xf32, #tpu.memory_space<vmem>>) attributes {dimension_semantics = [#tpu.dimension_semantics<parallel>], iteration_bounds = array<i64: 1>, scalar_prefetch = 0 : i64, scratch_operands = 0 : i64, tpu.core_type = #tpu.core_type<tc>, window_params = [{transform_indices = @transform_0, window_bounds = array<i64: 4, 512>}, {transform_indices = @transform_1, window_bounds = array<i64: 4, 512>}, {transform_indices = @transform_2, window_bounds = array<i64: 4, 512>}]} {
    %c0 = arith.constant 0 : index
    %c0_0 = arith.constant 0 : index
    %0 = vector.load %arg2[%c0, %c0_0] : memref<4x512xi32, #tpu.memory_space<vmem>>, vector<4x512xi32>
    %c-2147483648_i32 = arith.constant -2147483648 : i32
    %1 = vector.broadcast %c-2147483648_i32 : i32 to vector<4x512xi32>
    %2 = arith.cmpi uge, %0, %1 : vector<4x512xi32>
    %c0_1 = arith.constant 0 : index
    %c0_2 = arith.constant 0 : index
    %3 = vector.load %arg1[%c0_1, %c0_2] : memref<4x512xf32, #tpu.memory_space<vmem>>, vector<4x512xf32>
    %cst = arith.constant 2.000000e+00 : f32
    %4 = vector.broadcast %cst : f32 to vector<4x512xf32>
    %5 = arith.mulf %3, %4 : vector<4x512xf32>
    %cst_3 = arith.constant 0.000000e+00 : f32
    %6 = vector.broadcast %cst_3 : f32 to vector<4x512xf32>
    %7 = arith.select %2, %5, %6 : vector<4x512xi1>, vector<4x512xf32>
    %c0_4 = arith.constant 0 : index
    %c0_5 = arith.constant 0 : index
    %8 = vector.load %arg3[%c0_4, %c0_5] : memref<4x512xf32, #tpu.memory_space<vmem>>, vector<4x512xf32>
    tpu.vector_store %arg3[%c0_4, %c0_5], %7 {strides = array<i32>} : memref<4x512xf32, #tpu.memory_space<vmem>>, vector<4x512xf32>,
    return
  }
  func.func @transform_0(%arg0: i32) -> (i32, i32) {
    %c0_i32 = arith.constant 0 : i32
    %c0_i32_0 = arith.constant 0 : i32
    return %arg0, %c0_i32 : i32, i32
  }
  func.func @transform_1(%arg0: i32) -> (i32, i32) {
    %c0_i32 = arith.constant 0 : i32
    %c0_i32_0 = arith.constant 0 : i32
    return %arg0, %c0_i32 : i32, i32
  }
  func.func @transform_2(%arg0: i32) -> (i32, i32) {
    %c0_i32 = arith.constant 0 : i32
    %c0_i32_0 = arith.constant 0 : i32
    return %arg0, %c0_i32 : i32, i32
  }
}

</mosaic_0001>

<bundles_post_ra>
// kernel: tpu_custom_call.1
= control target key start
LH: loop header
LB: loop body
LE: loop exit
PB: predicated region body
PF: predicated region fallthrough
CT: control target
= control target key end

     0   :  { %7 = vsyncpa [#allocation3], 0  ;;  %s160_s0 = inlined_call_operand.hbm [shape: f32[4,512], index: 0, kind: input, shape index: {}]   ;;  %s161_s1 = inlined_call_operand.hbm [shape: u32[4,512], index: 1, kind: input, shape index: {}]   ;;  %s162_s2 = inlined_call_operand.hbm [shape: f32[4,512], index: 2, kind: output, shape index: {}]  }
   0x1   :  { %8 = vsyncpa [#allocation6], 0 }
   0x2   :  { %9 = vsyncpa [#allocation4], 0  ;;  %s133_s9 = smov [#allocation2]   ;;  %s134_s11 = smov [#allocation5]  }
   0x3   :  { %s16_s10 = sshll.u32 %s133_s9, 4  ;;  %s26_s12 = sshll.u32 %s134_s11, 4  ;;  %s17_s10 = int_to_ptr.vmem [resolvable:$true] %s16_s10  ;;  %s27_s12 = int_to_ptr.vmem [resolvable:$true] %s26_s12 }
   0x4   :  { %s75_s13 = scalar_lea.vmem %s17_s10, 256  ;;  %p80_p1 = scmp.lt.s32.totalorder %s17_s10, %s17_s10 }
   0x5   :  { %p76_p0 = scmp.ne.s32.totalorder %s17_s10, %s75_s13  ;;  %p81_p2 = scmp.lt.s32.totalorder %s75_s13, %s75_s13 }
   0x7   :  { %p82_p3 = por %p81_p2, %p80_p1 }
   0x9   :  { %p83_p4 = pnand %p82_p3, %p76_p0 }
   0xb   :  { %86 = shalt.err (!%p83_p4)
}
   0xc   :  { %19 = dma.hbm_to_vmem [thread:$0]  %s160_s0, 256, %s17_s10, [#allocation3]  }
   0xd   :  { %s95_s16 = scalar_lea.vmem %s27_s12, 256  ;;  %p100_p6 = scmp.lt.s32.totalorder %s27_s12, %s27_s12 }
   0xe   :  { %p96_p5 = scmp.ne.s32.totalorder %s27_s12, %s95_s16  ;;  %p101_p7 = scmp.lt.s32.totalorder %s95_s16, %s95_s16 }
  0x10   :  { %p102_p8 = por %p101_p7, %p100_p6 }
  0x12   :  { %p103_p9 = pnand %p102_p8, %p96_p5 }
  0x14   :  { %106 = shalt.err (!%p103_p9)
}
  0x15   :  { %29 = dma.hbm_to_vmem [thread:$0]  %s161_s1, 256, %s27_s12, [#allocation6]  }
  0x16   :  { %127 = dma.done.wait [#allocation3], 256  }
  0x17   :  { %128 = vsyncadd [#allocation3], 4294967040 }
  0x18   :  { %129 = dma.done.wait [#allocation6], 256  }
  0x19   :  { %130 = vsyncadd [#allocation6], 4294967040  ;;  %v36_v0 = vld [vmem:[#allocation5] sm:$0xff]  ;;  %v40_v1 = vld [vmem:[#allocation2] sm:$0xff]  ;;  %s135_s19 = smov [#allocation7]  }
  0x1a   :  { %v37_v2 = vld [vmem:[#allocation5 + $0x8] sm:$0xff]  ;;  %s54_s0 = sshll.u32 %s135_s19, 4  ;;  %vm38_vm0 = vcmp.ge.u32.totalorder %v36_v0, 2147483648  ;;  %v42_v3 = vmul.f32 2.0, %v40_v1  ;;  %v41_v4 = vld [vmem:[#allocation2 + $0x8] sm:$0xff]  ;;  %s55_s0 = int_to_ptr.vmem [resolvable:$true] %s54_s0 }
  0x1b   :  { %vm39_vm1 = vcmp.ge.u32.totalorder %v37_v2, 2147483648  ;;  %v43_v5 = vmul.f32 2.0, %v41_v4  ;;  %s107_s1 = scalar_lea.vmem %s55_s0, 256  ;;  %p112_p11 = scmp.lt.s32.totalorder %s55_s0, %s55_s0 }
  0x1c   :  { %v44_v6 = vsel %vm38_vm0, %v42_v3, 0.0  ;;  %p108_p10 = scmp.ne.s32.totalorder %s55_s0, %s107_s1  ;;  %p113_p12 = scmp.lt.s32.totalorder %s107_s1, %s107_s1 }
  0x1d   :  { %46 = vst [vmem:[#allocation7] sm:$0xff] %v44_v6  ;;  %v45_v7 = vsel %vm39_vm1, %v43_v5, 0.0 }
  0x1e   :  { %47 = vst [vmem:[#allocation7 + $0x8] sm:$0xff] %v45_v7  ;;  %p114_p13 = por %p113_p12, %p112_p11 }
  0x20   :  { %p115_p0 = pnand %p114_p13, %p108_p10 }
  0x22   :  { %118 = shalt.err (!%p115_p0)
}
  0x23   :  { %57 = dma.vmem_to_hbm [thread:$0]  %s55_s0, 256, %s162_s2, [#allocation4]  }
  0x24   :  { %131 = dma.done.wait [#allocation4], 256  }
  0x25   :  { %132 = vsyncadd [#allocation4], 4294967040 }
  0x26   :  { %61 = vsyncpa [#allocation3], 1 }
  0x27   :  { %62 = vsyncpa [#allocation6], 1 }
  0x28   :  { %63 = vsyncpa [#allocation4], 1 }

</bundles_post_ra>
